<compile_context>
chip_gen: v7x
topology: tpu7x:2x2x1
jax: 0.10.0
libtpu: 0.0.40
codegen_flags: <defaults>
</compile_context>

<pallas_src>
import functools

import jax
import jax.numpy as jnp
from jax import lax
from jax.experimental import pallas as pl
from jax.experimental.pallas import tpu as pltpu

INPUT_SIZE = 16
HIDDEN_SIZE = 32
OUTPUT_SIZE = 8
BATCH = 2
TIMESTEPS = 8


def lstm_head_kernel(x_ref, h0_ref, c0_ref, w_ref, b_ref,
                     outs_ref, hN_ref, cN_ref):
    """Full LSTM recurrence + fused output projection, everything in VMEM."""
    B, T, I = x_ref.shape
    H = h0_ref.shape[-1]
    O = outs_ref.shape[-1]
    bf16 = jnp.bfloat16

    # ---- Packed params: static ref slices (tile-aligned, free views). ----
    w_ih = w_ref[:I, :]                      # (I, 4H)  bf16
    w_hh = w_ref[I:I + H, :]                 # (H, 4H)  bf16
    w_out = w_ref[I + H:, :O]                # (H, O)   bf16
    bias = b_ref[...]                        # (2, 4H)  f32
    b_g = bias[0:1, :]                       # (1, 4H)
    b_o = bias[1:2, :O]                      # (1, O)

    # ---- Hoisted input projection: one bf16 MXU matmul for all timesteps. ----
    x2d = x_ref[...].reshape(B * T, I).astype(bf16)            # (B*T, I)
    gx = jnp.dot(x2d, w_ih, preferred_element_type=jnp.float32) + b_g  # f32
    # One-time relayout to time-major (off the serial chain) so the per-step
    # read is a contiguous leading-dim slice, not a sublane-strided extract.
    gxt = jnp.transpose(gx.reshape(B, T, 4 * H), (1, 0, 2))    # (T, B, 4H)

    h = h0_ref[0]                            # (B, H) f32
    c = c0_ref[0]                            # (B, H) f32

    # ---- Fully unrolled recurrence (T static & small). ----
    hs = []
    for t in range(T):
        gates = gxt[t] + jnp.dot(h.astype(bf16), w_hh,
                                 preferred_element_type=jnp.float32)  # (B, 4H)
        # Single EUP sigmoid over the whole gate block; g-gate columns were
        # pre-scaled by 2 at param prep, so tanh(z) = 2*sigmoid(2z) - 1.
        s = jax.nn.sigmoid(gates)
        i_g = s[:, 0 * H:1 * H]
        f_g = s[:, 1 * H:2 * H]
        g_g = 2.0 * s[:, 2 * H:3 * H] - 1.0
        o_g = s[:, 3 * H:4 * H]
        c = f_g * c + i_g * g_g
        h = o_g * jnp.tanh(c)
        hs.append(h)                         # stays in vregs, no VMEM store

    hN_ref[0, :, :] = h
    cN_ref[0, :, :] = c

    # ---- Hoisted output head: one concat, one bf16 matmul, one store. ----
    h_all = jnp.concatenate([ht[:, None, :] for ht in hs], axis=1)   # (B, T, H)
    h2d = h_all.reshape(B * T, H).astype(bf16)
    outs = jnp.dot(h2d, w_out, preferred_element_type=jnp.float32) + b_o
    outs_ref[...] = outs.reshape(B, T, O)


@functools.partial(jax.jit, donate_argnums=(1, 2))
def rnn_forward(x, h1, h2, params):
    """x: (B, T, I) f32. h1/h2: (1, B, H) f32. Returns (outs, (h1', h2'))."""
    B, T, _ = x.shape
    H, O = HIDDEN_SIZE, OUTPUT_SIZE
    vmem = pl.BlockSpec(memory_space=pltpu.MemorySpace.VMEM)

    outs, hN, cN = pl.pallas_call(
        lstm_head_kernel,
        out_shape=(
            jax.ShapeDtypeStruct((B, T, O), jnp.float32),
            jax.ShapeDtypeStruct((1, B, H), jnp.float32),
            jax.ShapeDtypeStruct((1, B, H), jnp.float32),
        ),
        in_specs=[vmem] * 5,
        out_specs=(vmem, vmem, vmem),
        # Recurrent state updates in place (h1 -> hN, h2 -> cN).
        input_output_aliases={1: 1, 2: 2},
    )(x, h1, h2, params["w_pack"], params["b_pack"])

    return outs, (hN, cN)


def make_params(key):
    """Deterministic init mirroring PyTorch's U(-1/sqrt(H), 1/sqrt(H))."""
    H, I, O = HIDDEN_SIZE, INPUT_SIZE, OUTPUT_SIZE
    bound = 1.0 / (H ** 0.5)
    ks = jax.random.split(key, 6)
    u = lambda k, shape: jax.random.uniform(k, shape, jnp.float32, -bound, bound)
    w_ih_t = u(ks[0], (4 * H, I))     # torch layout (4H, I), gate order [i,f,g,o]
    w_hh_t = u(ks[1], (4 * H, H))     # torch layout (4H, H)
    b_ih = u(ks[2], (4 * H,))
    b_hh = u(ks[3], (4 * H,))
    w_out_t = u(ks[4], (O, H))        # torch Linear layout (O, H)
    b_out = u(ks[5], (O,))

    w_ih = jnp.transpose(w_ih_t)                  # (I, 4H)
    w_hh = jnp.transpose(w_hh_t)                  # (H, 4H)
    b = (b_ih + b_hh)[None, :]                    # (1, 4H)
    w_out = jnp.transpose(w_out_t)                # (H, O)

    # Pre-scale the g-gate columns by 2 (exact: power-of-two scaling) so the
    # kernel recovers tanh(z) = 2*sigmoid(2z) - 1 with a single sigmoid call.
    def scale_g(a):
        return a.at[..., 2 * H:3 * H].multiply(2.0)

    w_ih_k = scale_g(w_ih).astype(jnp.bfloat16)
    w_hh_k = scale_g(w_hh).astype(jnp.bfloat16)
    b_k = scale_g(b)                              # stays f32

    # Pack all MXU weights into ONE (I + 2H, 4H) bf16 buffer (fewer param DMAs).
    w_out_pad = (jnp.zeros((H, 4 * H), jnp.float32)
                 .at[:, :O].set(w_out).astype(jnp.bfloat16))
    w_pack = jnp.concatenate([w_ih_k, w_hh_k, w_out_pad], axis=0)   # (80, 128)

    # Pack both biases into ONE (2, 4H) f32 buffer.
    b_out_pad = jnp.zeros((1, 4 * H), jnp.float32).at[0, :O].set(b_out)
    b_pack = jnp.concatenate([b_k, b_out_pad], axis=0)              # (2, 128)

    return {
        "w_pack": w_pack,
        "b_pack": b_pack,
        # Unscaled f32 torch-gate-order copies used only by the pure-JAX ref.
        "w_ih_ref": w_ih, "w_hh_ref": w_hh, "b_ref": b,
        "w_out_ref": w_out, "b_out_ref": b_out[None, :],
    }


def rnn_forward_ref(x, h1, h2, params):
    """Pure-JAX reference (lax.scan, torch gate order, bf16 MXU operands)."""
    H = HIDDEN_SIZE
    bf16 = jnp.bfloat16
    wih = params["w_ih_ref"].astype(bf16)
    whh = params["w_hh_ref"].astype(bf16)
    wout = params["w_out_ref"].astype(bf16)
    x_tm = jnp.transpose(x, (1, 0, 2))

    def step(carry, x_t):
        h, c = carry
        gates = (jnp.dot(x_t.astype(bf16), wih, preferred_element_type=jnp.float32)
                 + jnp.dot(h.astype(bf16), whh, preferred_element_type=jnp.float32)
                 + params["b_ref"])
        i_g = jax.nn.sigmoid(gates[:, 0 * H:1 * H])
        f_g = jax.nn.sigmoid(gates[:, 1 * H:2 * H])
        g_g = jnp.tanh(gates[:, 2 * H:3 * H])
        o_g = jax.nn.sigmoid(gates[:, 3 * H:4 * H])
        c = f_g * c + i_g * g_g
        h = o_g * jnp.tanh(c)
        out = (jnp.dot(h.astype(bf16), wout, preferred_element_type=jnp.float32)
               + params["b_out_ref"])
        return (h, c), out

    (hN, cN), outs_tm = lax.scan(step, (h1[0], h2[0]), x_tm)
    return jnp.transpose(outs_tm, (1, 0, 2)), (hN[None], cN[None])


if __name__ == "__main__":
    key = jax.random.PRNGKey(0)
    k_param, k_x = jax.random.split(key, 2)

    params = make_params(k_param)
    x = jax.random.normal(k_x, (BATCH, TIMESTEPS, INPUT_SIZE), jnp.float32)
    # Case "h1 is None" in the PyTorch forward -> zero initial states.
    h1 = jnp.zeros((1, BATCH, HIDDEN_SIZE), jnp.float32)
    h2 = jnp.zeros((1, BATCH, HIDDEN_SIZE), jnp.float32)

    # Compute the reference FIRST: h1/h2 buffers are donated to the kernel call.
    outs_r, (h1_r, h2_r) = rnn_forward_ref(x, h1, h2, params)

    outs, (h1_n, h2_n) = rnn_forward(x, h1, h2, params)
    jax.block_until_ready((outs, h1_n, h2_n))

    assert outs.shape == (BATCH, TIMESTEPS, OUTPUT_SIZE)
    assert h1_n.shape == (1, BATCH, HIDDEN_SIZE)
    assert h2_n.shape == (1, BATCH, HIDDEN_SIZE)
    assert jnp.allclose(outs, outs_r, rtol=5e-3, atol=5e-3)
    assert jnp.allclose(h1_n, h1_r, rtol=5e-3, atol=5e-3)
    assert jnp.allclose(h2_n, h2_r, rtol=5e-3, atol=5e-3)

    # Second call exercising the "h1 is not None" branch (carry states forward).
    outs2_r, (h1_r2, h2_r2) = rnn_forward_ref(x, h1_r, h2_r, params)
    outs2, (h1_n2, h2_n2) = rnn_forward(x, h1_n, h2_n, params)  # donates h1_n/h2_n
    jax.block_until_ready((outs2, h1_n2, h2_n2))
    assert jnp.allclose(outs2, outs2_r, rtol=5e-3, atol=5e-3)
    assert jnp.allclose(h1_n2, h1_r2, rtol=5e-3, atol=5e-3)
    assert jnp.allclose(h2_n2, h2_r2, rtol=5e-3, atol=5e-3)

    print("KERNEL_OK")
</pallas_src>

<mosaic_0001>
module attributes {stable_mosaic.version = 11 : i64} {
  func.func @lstm_head_kernel(%arg0: memref<2x8x16xf32, #tpu.memory_space<vmem>>, %arg1: memref<1x2x32xf32, #tpu.memory_space<vmem>>, %arg2: memref<1x2x32xf32, #tpu.memory_space<vmem>>, %arg3: memref<80x128xbf16, #tpu.memory_space<vmem>>, %arg4: memref<2x128xf32, #tpu.memory_space<vmem>>, %arg5: memref<2x8x8xf32, #tpu.memory_space<vmem>>, %arg6: memref<1x2x32xf32, #tpu.memory_space<vmem>>, %arg7: memref<1x2x32xf32, #tpu.memory_space<vmem>>) attributes {dimension_semantics = [], scalar_prefetch = 0 : i64, scratch_operands = 0 : i64, tpu.core_type = #tpu.core_type<tc>} {
    %c0 = arith.constant 0 : index
    %c0_0 = arith.constant 0 : index
    %0 = vector.load %arg3[%c0, %c0_0] : memref<80x128xbf16, #tpu.memory_space<vmem>>, vector<16x128xbf16>
    %c16 = arith.constant 16 : index
    %c0_1 = arith.constant 0 : index
    %1 = vector.load %arg3[%c16, %c0_1] : memref<80x128xbf16, #tpu.memory_space<vmem>>, vector<32x128xbf16>
    %c48 = arith.constant 48 : index
    %c0_2 = arith.constant 0 : index
    %2 = vector.load %arg3[%c48, %c0_2] : memref<80x128xbf16, #tpu.memory_space<vmem>>, vector<32x8xbf16>
    %c0_3 = arith.constant 0 : index
    %c0_4 = arith.constant 0 : index
    %3 = vector.load %arg4[%c0_3, %c0_4] : memref<2x128xf32, #tpu.memory_space<vmem>>, vector<2x128xf32>
    %4 = vector.extract_strided_slice %3 {offsets = [0, 0], sizes = [1, 128], strides = [1, 1]} : vector<2x128xf32> to vector<1x128xf32>
    %5 = vector.extract_strided_slice %3 {offsets = [1, 0], sizes = [1, 8], strides = [1, 1]} : vector<2x128xf32> to vector<1x8xf32>
    %c0_5 = arith.constant 0 : index
    %c0_6 = arith.constant 0 : index
    %c0_7 = arith.constant 0 : index
    %6 = vector.load %arg0[%c0_5, %c0_6, %c0_7] : memref<2x8x16xf32, #tpu.memory_space<vmem>>, vector<2x8x16xf32>
    %7 = vector.shape_cast %6 : vector<2x8x16xf32> to vector<16x16xf32>
    %8 = arith.truncf %7 : vector<16x16xf32> to vector<16x16xbf16>
    %cst = arith.constant dense<0.000000e+00> : vector<16x128xf32>
    %9 = tpu.matmul %8, %0, %cst {dimension_numbers = #tpu.dot_dimension_numbers<[1], [0], [0], [1], [0, 0, 1, 1], [], []>} : vector<16x16xbf16>, vector<16x128xbf16>, vector<16x128xf32> -> vector<16x128xf32>
    %10 = vector.broadcast %4 : vector<1x128xf32> to vector<16x128xf32>
    %11 = arith.addf %9, %10 : vector<16x128xf32>
    %12 = vector.shape_cast %11 : vector<16x128xf32> to vector<2x8x128xf32>
    %13 = tpu.transpose %12, [1, 0, 2] : vector<2x8x128xf32> -> vector<8x2x128xf32>
    %c0_8 = arith.constant 0 : index
    %c0_9 = arith.constant 0 : index
    %c0_10 = arith.constant 0 : index
    %14 = vector.load %arg1[%c0_8, %c0_9, %c0_10] : memref<1x2x32xf32, #tpu.memory_space<vmem>>, vector<1x2x32xf32>
    %15 = vector.shape_cast %14 : vector<1x2x32xf32> to vector<2x32xf32>
    %c0_11 = arith.constant 0 : index
    %c0_12 = arith.constant 0 : index
    %c0_13 = arith.constant 0 : index
    %16 = vector.load %arg2[%c0_11, %c0_12, %c0_13] : memref<1x2x32xf32, #tpu.memory_space<vmem>>, vector<1x2x32xf32>
    %17 = vector.shape_cast %16 : vector<1x2x32xf32> to vector<2x32xf32>
    %18 = vector.extract_strided_slice %13 {offsets = [0, 0, 0], sizes = [1, 2, 128], strides = [1, 1, 1]} : vector<8x2x128xf32> to vector<1x2x128xf32>
    %19 = vector.shape_cast %18 : vector<1x2x128xf32> to vector<2x128xf32>
    %20 = arith.truncf %15 : vector<2x32xf32> to vector<2x32xbf16>
    %cst_14 = arith.constant dense<0.000000e+00> : vector<2x128xf32>
    %21 = tpu.matmul %20, %1, %cst_14 {dimension_numbers = #tpu.dot_dimension_numbers<[1], [0], [0], [1], [0, 0, 1, 1], [], []>} : vector<2x32xbf16>, vector<32x128xbf16>, vector<2x128xf32> -> vector<2x128xf32>
    %22 = arith.addf %19, %21 : vector<2x128xf32>
    %23 = arith.negf %22 : vector<2x128xf32>
    %24 = math.exp %23 : vector<2x128xf32>
    %cst_15 = arith.constant 1.000000e+00 : f32
    %25 = vector.broadcast %cst_15 : f32 to vector<2x128xf32>
    %26 = arith.addf %25, %24 : vector<2x128xf32>
    %27 = arith.divf %25, %26 : vector<2x128xf32>
    %28 = vector.extract_strided_slice %27 {offsets = [0, 0], sizes = [2, 32], strides = [1, 1]} : vector<2x128xf32> to vector<2x32xf32>
    %29 = vector.extract_strided_slice %27 {offsets = [0, 32], sizes = [2, 32], strides = [1, 1]} : vector<2x128xf32> to vector<2x32xf32>
    %30 = vector.extract_strided_slice %27 {offsets = [0, 64], sizes = [2, 32], strides = [1, 1]} : vector<2x128xf32> to vector<2x32xf32>
    %cst_16 = arith.constant 2.000000e+00 : f32
    %31 = vector.broadcast %cst_16 : f32 to vector<2x32xf32>
    %32 = arith.mulf %31, %30 : vector<2x32xf32>
    %cst_17 = arith.constant 1.000000e+00 : f32
    %33 = vector.broadcast %cst_17 : f32 to vector<2x32xf32>
    %34 = arith.subf %32, %33 : vector<2x32xf32>
    %35 = vector.extract_strided_slice %27 {offsets = [0, 96], sizes = [2, 32], strides = [1, 1]} : vector<2x128xf32> to vector<2x32xf32>
    %36 = arith.mulf %29, %17 : vector<2x32xf32>
    %37 = arith.mulf %28, %34 : vector<2x32xf32>
    %38 = arith.addf %36, %37 : vector<2x32xf32>
    %39 = math.tanh %38 : vector<2x32xf32>
    %40 = arith.mulf %35, %39 : vector<2x32xf32>
    %41 = vector.extract_strided_slice %13 {offsets = [1, 0, 0], sizes = [1, 2, 128], strides = [1, 1, 1]} : vector<8x2x128xf32> to vector<1x2x128xf32>
    %42 = vector.shape_cast %41 : vector<1x2x128xf32> to vector<2x128xf32>
    %43 = arith.truncf %40 : vector<2x32xf32> to vector<2x32xbf16>
    %cst_18 = arith.constant dense<0.000000e+00> : vector<2x128xf32>
    %44 = tpu.matmul %43, %1, %cst_18 {dimension_numbers = #tpu.dot_dimension_numbers<[1], [0], [0], [1], [0, 0, 1, 1], [], []>} : vector<2x32xbf16>, vector<32x128xbf16>, vector<2x128xf32> -> vector<2x128xf32>
    %45 = arith.addf %42, %44 : vector<2x128xf32>
    %46 = arith.negf %45 : vector<2x128xf32>
    %47 = math.exp %46 : vector<2x128xf32>
    %cst_19 = arith.constant 1.000000e+00 : f32
    %48 = vector.broadcast %cst_19 : f32 to vector<2x128xf32>
    %49 = arith.addf %48, %47 : vector<2x128xf32>
    %50 = arith.divf %48, %49 : vector<2x128xf32>
    %51 = vector.extract_strided_slice %50 {offsets = [0, 0], sizes = [2, 32], strides = [1, 1]} : vector<2x128xf32> to vector<2x32xf32>
    %52 = vector.extract_strided_slice %50 {offsets = [0, 32], sizes = [2, 32], strides = [1, 1]} : vector<2x128xf32> to vector<2x32xf32>
    %53 = vector.extract_strided_slice %50 {offsets = [0, 64], sizes = [2, 32], strides = [1, 1]} : vector<2x128xf32> to vector<2x32xf32>
    %cst_20 = arith.constant 2.000000e+00 : f32
    %54 = vector.broadcast %cst_20 : f32 to vector<2x32xf32>
    %55 = arith.mulf %54, %53 : vector<2x32xf32>
    %cst_21 = arith.constant 1.000000e+00 : f32
    %56 = vector.broadcast %cst_21 : f32 to vector<2x32xf32>
    %57 = arith.subf %55, %56 : vector<2x32xf32>
    %58 = vector.extract_strided_slice %50 {offsets = [0, 96], sizes = [2, 32], strides = [1, 1]} : vector<2x128xf32> to vector<2x32xf32>
    %59 = arith.mulf %52, %38 : vector<2x32xf32>
    %60 = arith.mulf %51, %57 : vector<2x32xf32>
    %61 = arith.addf %59, %60 : vector<2x32xf32>
    %62 = math.tanh %61 : vector<2x32xf32>
    %63 = arith.mulf %58, %62 : vector<2x32xf32>
    %64 = vector.extract_strided_slice %13 {offsets = [2, 0, 0], sizes = [1, 2, 128], strides = [1, 1, 1]} : vector<8x2x128xf32> to vector<1x2x128xf32>
    %65 = vector.shape_cast %64 : vector<1x2x128xf32> to vector<2x128xf32>
    %66 = arith.truncf %63 : vector<2x32xf32> to vector<2x32xbf16>
    %cst_22 = arith.constant dense<0.000000e+00> : vector<2x128xf32>
    %67 = tpu.matmul %66, %1, %cst_22 {dimension_numbers = #tpu.dot_dimension_numbers<[1], [0], [0], [1], [0, 0, 1, 1], [], []>} : vector<2x32xbf16>, vector<32x128xbf16>, vector<2x128xf32> -> vector<2x128xf32>
    %68 = arith.addf %65, %67 : vector<2x128xf32>
    %69 = arith.negf %68 : vector<2x128xf32>
    %70 = math.exp %69 : vector<2x128xf32>
    %cst_23 = arith.constant 1.000000e+00 : f32
    %71 = vector.broadcast %cst_23 : f32 to vector<2x128xf32>
    %72 = arith.addf %71, %70 : vector<2x128xf32>
    %73 = arith.divf %71, %72 : vector<2x128xf32>
    %74 = vector.extract_strided_slice %73 {offsets = [0, 0], sizes = [2, 32], strides = [1, 1]} : vector<2x128xf32> to vector<2x32xf32>
    %75 = vector.extract_strided_slice %73 {offsets = [0, 32], sizes = [2, 32], strides = [1, 1]} : vector<2x128xf32> to vector<2x32xf32>
    %76 = vector.extract_strided_slice %73 {offsets = [0, 64], sizes = [2, 32], strides = [1, 1]} : vector<2x128xf32> to vector<2x32xf32>
    %cst_24 = arith.constant 2.000000e+00 : f32
    %77 = vector.broadcast %cst_24 : f32 to vector<2x32xf32>
    %78 = arith.mulf %77, %76 : vector<2x32xf32>
    %cst_25 = arith.constant 1.000000e+00 : f32
    %79 = vector.broadcast %cst_25 : f32 to vector<2x32xf32>
    %80 = arith.subf %78, %79 : vector<2x32xf32>
    %81 = vector.extract_strided_slice %73 {offsets = [0, 96], sizes = [2, 32], strides = [1, 1]} : vector<2x128xf32> to vector<2x32xf32>
    %82 = arith.mulf %75, %61 : vector<2x32xf32>
    %83 = arith.mulf %74, %80 : vector<2x32xf32>
    %84 = arith.addf %82, %83 : vector<2x32xf32>
    %85 = math.tanh %84 : vector<2x32xf32>
    %86 = arith.mulf %81, %85 : vector<2x32xf32>
    %87 = vector.extract_strided_slice %13 {offsets = [3, 0, 0], sizes = [1, 2, 128], strides = [1, 1, 1]} : vector<8x2x128xf32> to vector<1x2x128xf32>
    %88 = vector.shape_cast %87 : vector<1x2x128xf32> to vector<2x128xf32>
    %89 = arith.truncf %86 : vector<2x32xf32> to vector<2x32xbf16>
    %cst_26 = arith.constant dense<0.000000e+00> : vector<2x128xf32>
    %90 = tpu.matmul %89, %1, %cst_26 {dimension_numbers = #tpu.dot_dimension_numbers<[1], [0], [0], [1], [0, 0, 1, 1], [], []>} : vector<2x32xbf16>, vector<32x128xbf16>, vector<2x128xf32> -> vector<2x128xf32>
    %91 = arith.addf %88, %90 : vector<2x128xf32>
    %92 = arith.negf %91 : vector<2x128xf32>
    %93 = math.exp %92 : vector<2x128xf32>
    %cst_27 = arith.constant 1.000000e+00 : f32
    %94 = vector.broadcast %cst_27 : f32 to vector<2x128xf32>
    %95 = arith.addf %94, %93 : vector<2x128xf32>
    %96 = arith.divf %94, %95 : vector<2x128xf32>
    %97 = vector.extract_strided_slice %96 {offsets = [0, 0], sizes = [2, 32], strides = [1, 1]} : vector<2x128xf32> to vector<2x32xf32>
    %98 = vector.extract_strided_slice %96 {offsets = [0, 32], sizes = [2, 32], strides = [1, 1]} : vector<2x128xf32> to vector<2x32xf32>
    %99 = vector.extract_strided_slice %96 {offsets = [0, 64], sizes = [2, 32], strides = [1, 1]} : vector<2x128xf32> to vector<2x32xf32>
    %cst_28 = arith.constant 2.000000e+00 : f32
    %100 = vector.broadcast %cst_28 : f32 to vector<2x32xf32>
    %101 = arith.mulf %100, %99 : vector<2x32xf32>
    %cst_29 = arith.constant 1.000000e+00 : f32
    %102 = vector.broadcast %cst_29 : f32 to vector<2x32xf32>
    %103 = arith.subf %101, %102 : vector<2x32xf32>
    %104 = vector.extract_strided_slice %96 {offsets = [0, 96], sizes = [2, 32], strides = [1, 1]} : vector<2x128xf32> to vector<2x32xf32>
    %105 = arith.mulf %98, %84 : vector<2x32xf32>
    %106 = arith.mulf %97, %103 : vector<2x32xf32>
    %107 = arith.addf %105, %106 : vector<2x32xf32>
    %108 = math.tanh %107 : vector<2x32xf32>
    %109 = arith.mulf %104, %108 : vector<2x32xf32>
    %110 = vector.extract_strided_slice %13 {offsets = [4, 0, 0], sizes = [1, 2, 128], strides = [1, 1, 1]} : vector<8x2x128xf32> to vector<1x2x128xf32>
    %111 = vector.shape_cast %110 : vector<1x2x128xf32> to vector<2x128xf32>
    %112 = arith.truncf %109 : vector<2x32xf32> to vector<2x32xbf16>
    %cst_30 = arith.constant dense<0.000000e+00> : vector<2x128xf32>
    %113 = tpu.matmul %112, %1, %cst_30 {dimension_numbers = #tpu.dot_dimension_numbers<[1], [0], [0], [1], [0, 0, 1, 1], [], []>} : vector<2x32xbf16>, vector<32x128xbf16>, vector<2x128xf32> -> vector<2x128xf32>
    %114 = arith.addf %111, %113 : vector<2x128xf32>
    %115 = arith.negf %114 : vector<2x128xf32>
    %116 = math.exp %115 : vector<2x128xf32>
    %cst_31 = arith.constant 1.000000e+00 : f32
    %117 = vector.broadcast %cst_31 : f32 to vector<2x128xf32>
    %118 = arith.addf %117, %116 : vector<2x128xf32>
    %119 = arith.divf %117, %118 : vector<2x128xf32>
    %120 = vector.extract_strided_slice %119 {offsets = [0, 0], sizes = [2, 32], strides = [1, 1]} : vector<2x128xf32> to vector<2x32xf32>
    %121 = vector.extract_strided_slice %119 {offsets = [0, 32], sizes = [2, 32], strides = [1, 1]} : vector<2x128xf32> to vector<2x32xf32>
    %122 = vector.extract_strided_slice %119 {offsets = [0, 64], sizes = [2, 32], strides = [1, 1]} : vector<2x128xf32> to vector<2x32xf32>
    %cst_32 = arith.constant 2.000000e+00 : f32
    %123 = vector.broadcast %cst_32 : f32 to vector<2x32xf32>
    %124 = arith.mulf %123, %122 : vector<2x32xf32>
    %cst_33 = arith.constant 1.000000e+00 : f32
    %125 = vector.broadcast %cst_33 : f32 to vector<2x32xf32>
    %126 = arith.subf %124, %125 : vector<2x32xf32>
    %127 = vector.extract_strided_slice %119 {offsets = [0, 96], sizes = [2, 32], strides = [1, 1]} : vector<2x128xf32> to vector<2x32xf32>
    %128 = arith.mulf %121, %107 : vector<2x32xf32>
    %129 = arith.mulf %120, %126 : vector<2x32xf32>
    %130 = arith.addf %128, %129 : vector<2x32xf32>
    %131 = math.tanh %130 : vector<2x32xf32>
    %132 = arith.mulf %127, %131 : vector<2x32xf32>
    %133 = vector.extract_strided_slice %13 {offsets = [5, 0, 0], sizes = [1, 2, 128], strides = [1, 1, 1]} : vector<8x2x128xf32> to vector<1x2x128xf32>
    %134 = vector.shape_cast %133 : vector<1x2x128xf32> to vector<2x128xf32>
    %135 = arith.truncf %132 : vector<2x32xf32> to vector<2x32xbf16>
    %cst_34 = arith.constant dense<0.000000e+00> : vector<2x128xf32>
    %136 = tpu.matmul %135, %1, %cst_34 {dimension_numbers = #tpu.dot_dimension_numbers<[1], [0], [0], [1], [0, 0, 1, 1], [], []>} : vector<2x32xbf16>, vector<32x128xbf16>, vector<2x128xf32> -> vector<2x128xf32>
    %137 = arith.addf %134, %136 : vector<2x128xf32>
    %138 = arith.negf %137 : vector<2x128xf32>
    %139 = math.exp %138 : vector<2x128xf32>
    %cst_35 = arith.constant 1.000000e+00 : f32
    %140 = vector.broadcast %cst_35 : f32 to vector<2x128xf32>
    %141 = arith.addf %140, %139 : vector<2x128xf32>
    %142 = arith.divf %140, %141 : vector<2x128xf32>
    %143 = vector.extract_strided_slice %142 {offsets = [0, 0], sizes = [2, 32], strides = [1, 1]} : vector<2x128xf32> to vector<2x32xf32>
    %144 = vector.extract_strided_slice %142 {offsets = [0, 32], sizes = [2, 32], strides = [1, 1]} : vector<2x128xf32> to vector<2x32xf32>
    %145 = vector.extract_strided_slice %142 {offsets = [0, 64], sizes = [2, 32], strides = [1, 1]} : vector<2x128xf32> to vector<2x32xf32>
    %cst_36 = arith.constant 2.000000e+00 : f32
    %146 = vector.broadcast %cst_36 : f32 to vector<2x32xf32>
    %147 = arith.mulf %146, %145 : vector<2x32xf32>
    %cst_37 = arith.constant 1.000000e+00 : f32
    %148 = vector.broadcast %cst_37 : f32 to vector<2x32xf32>
    %149 = arith.subf %147, %148 : vector<2x32xf32>
    %150 = vector.extract_strided_slice %142 {offsets = [0, 96], sizes = [2, 32], strides = [1, 1]} : vector<2x128xf32> to vector<2x32xf32>
    %151 = arith.mulf %144, %130 : vector<2x32xf32>
    %152 = arith.mulf %143, %149 : vector<2x32xf32>
    %153 = arith.addf %151, %152 : vector<2x32xf32>
    %154 = math.tanh %153 : vector<2x32xf32>
    %155 = arith.mulf %150, %154 : vector<2x32xf32>
    %156 = vector.extract_strided_slice %13 {offsets = [6, 0, 0], sizes = [1, 2, 128], strides = [1, 1, 1]} : vector<8x2x128xf32> to vector<1x2x128xf32>
    %157 = vector.shape_cast %156 : vector<1x2x128xf32> to vector<2x128xf32>
    %158 = arith.truncf %155 : vector<2x32xf32> to vector<2x32xbf16>
    %cst_38 = arith.constant dense<0.000000e+00> : vector<2x128xf32>
    %159 = tpu.matmul %158, %1, %cst_38 {dimension_numbers = #tpu.dot_dimension_numbers<[1], [0], [0], [1], [0, 0, 1, 1], [], []>} : vector<2x32xbf16>, vector<32x128xbf16>, vector<2x128xf32> -> vector<2x128xf32>
    %160 = arith.addf %157, %159 : vector<2x128xf32>
    %161 = arith.negf %160 : vector<2x128xf32>
    %162 = math.exp %161 : vector<2x128xf32>
    %cst_39 = arith.constant 1.000000e+00 : f32
    %163 = vector.broadcast %cst_39 : f32 to vector<2x128xf32>
    %164 = arith.addf %163, %162 : vector<2x128xf32>
    %165 = arith.divf %163, %164 : vector<2x128xf32>
    %166 = vector.extract_strided_slice %165 {offsets = [0, 0], sizes = [2, 32], strides = [1, 1]} : vector<2x128xf32> to vector<2x32xf32>
    %167 = vector.extract_strided_slice %165 {offsets = [0, 32], sizes = [2, 32], strides = [1, 1]} : vector<2x128xf32> to vector<2x32xf32>
    %168 = vector.extract_strided_slice %165 {offsets = [0, 64], sizes = [2, 32], strides = [1, 1]} : vector<2x128xf32> to vector<2x32xf32>
    %cst_40 = arith.constant 2.000000e+00 : f32
    %169 = vector.broadcast %cst_40 : f32 to vector<2x32xf32>
    %170 = arith.mulf %169, %168 : vector<2x32xf32>
    %cst_41 = arith.constant 1.000000e+00 : f32
    %171 = vector.broadcast %cst_41 : f32 to vector<2x32xf32>
    %172 = arith.subf %170, %171 : vector<2x32xf32>
    %173 = vector.extract_strided_slice %165 {offsets = [0, 96], sizes = [2, 32], strides = [1, 1]} : vector<2x128xf32> to vector<2x32xf32>
    %174 = arith.mulf %167, %153 : vector<2x32xf32>
    %175 = arith.mulf %166, %172 : vector<2x32xf32>
    %176 = arith.addf %174, %175 : vector<2x32xf32>
    %177 = math.tanh %176 : vector<2x32xf32>
    %178 = arith.mulf %173, %177 : vector<2x32xf32>
    %179 = vector.extract_strided_slice %13 {offsets = [7, 0, 0], sizes = [1, 2, 128], strides = [1, 1, 1]} : vector<8x2x128xf32> to vector<1x2x128xf32>
    %180 = vector.shape_cast %179 : vector<1x2x128xf32> to vector<2x128xf32>
    %181 = arith.truncf %178 : vector<2x32xf32> to vector<2x32xbf16>
    %cst_42 = arith.constant dense<0.000000e+00> : vector<2x128xf32>
    %182 = tpu.matmul %181, %1, %cst_42 {dimension_numbers = #tpu.dot_dimension_numbers<[1], [0], [0], [1], [0, 0, 1, 1], [], []>} : vector<2x32xbf16>, vector<32x128xbf16>, vector<2x128xf32> -> vector<2x128xf32>
    %183 = arith.addf %180, %182 : vector<2x128xf32>
    %184 = arith.negf %183 : vector<2x128xf32>
    %185 = math.exp %184 : vector<2x128xf32>
    %cst_43 = arith.constant 1.000000e+00 : f32
    %186 = vector.broadcast %cst_43 : f32 to vector<2x128xf32>
    %187 = arith.addf %186, %185 : vector<2x128xf32>
    %188 = arith.divf %186, %187 : vector<2x128xf32>
    %189 = vector.extract_strided_slice %188 {offsets = [0, 0], sizes = [2, 32], strides = [1, 1]} : vector<2x128xf32> to vector<2x32xf32>
    %190 = vector.extract_strided_slice %188 {offsets = [0, 32], sizes = [2, 32], strides = [1, 1]} : vector<2x128xf32> to vector<2x32xf32>
    %191 = vector.extract_strided_slice %188 {offsets = [0, 64], sizes = [2, 32], strides = [1, 1]} : vector<2x128xf32> to vector<2x32xf32>
    %cst_44 = arith.constant 2.000000e+00 : f32
    %192 = vector.broadcast %cst_44 : f32 to vector<2x32xf32>
    %193 = arith.mulf %192, %191 : vector<2x32xf32>
    %cst_45 = arith.constant 1.000000e+00 : f32
    %194 = vector.broadcast %cst_45 : f32 to vector<2x32xf32>
    %195 = arith.subf %193, %194 : vector<2x32xf32>
    %196 = vector.extract_strided_slice %188 {offsets = [0, 96], sizes = [2, 32], strides = [1, 1]} : vector<2x128xf32> to vector<2x32xf32>
    %197 = arith.mulf %190, %176 : vector<2x32xf32>
    %198 = arith.mulf %189, %195 : vector<2x32xf32>
    %199 = arith.addf %197, %198 : vector<2x32xf32>
    %200 = math.tanh %199 : vector<2x32xf32>
    %201 = arith.mulf %196, %200 : vector<2x32xf32>
    %c0_46 = arith.constant 0 : index
    %c0_47 = arith.constant 0 : index
    %c0_48 = arith.constant 0 : index
    %202 = vector.load %arg6[%c0_46, %c0_47, %c0_48] : memref<1x2x32xf32, #tpu.memory_space<vmem>>, vector<1x2x32xf32>
    %203 = vector.shape_cast %202 : vector<1x2x32xf32> to vector<2x32xf32>
    %204 = vector.shape_cast %201 : vector<2x32xf32> to vector<1x2x32xf32>
    tpu.vector_store %arg6[%c0_46, %c0_47, %c0_48], %204 {strides = array<i32>} : memref<1x2x32xf32, #tpu.memory_space<vmem>>, vector<1x2x32xf32>,
    %c0_49 = arith.constant 0 : index
    %c0_50 = arith.constant 0 : index
    %c0_51 = arith.constant 0 : index
    %205 = vector.load %arg7[%c0_49, %c0_50, %c0_51] : memref<1x2x32xf32, #tpu.memory_space<vmem>>, vector<1x2x32xf32>
    %206 = vector.shape_cast %205 : vector<1x2x32xf32> to vector<2x32xf32>
    %207 = vector.shape_cast %199 : vector<2x32xf32> to vector<1x2x32xf32>
    tpu.vector_store %arg7[%c0_49, %c0_50, %c0_51], %207 {strides = array<i32>} : memref<1x2x32xf32, #tpu.memory_space<vmem>>, vector<1x2x32xf32>,
    %208 = vector.shape_cast %40 : vector<2x32xf32> to vector<2x1x32xf32>
    %209 = vector.shape_cast %63 : vector<2x32xf32> to vector<2x1x32xf32>
    %210 = vector.shape_cast %86 : vector<2x32xf32> to vector<2x1x32xf32>
    %211 = vector.shape_cast %109 : vector<2x32xf32> to vector<2x1x32xf32>
    %212 = vector.shape_cast %132 : vector<2x32xf32> to vector<2x1x32xf32>
    %213 = vector.shape_cast %155 : vector<2x32xf32> to vector<2x1x32xf32>
    %214 = vector.shape_cast %178 : vector<2x32xf32> to vector<2x1x32xf32>
    %215 = vector.shape_cast %201 : vector<2x32xf32> to vector<2x1x32xf32>
    %216 = tpu.concatenate %208, %209, %210, %211, %212, %213, %214, %215 in 1 : vector<2x1x32xf32>, vector<2x1x32xf32>, vector<2x1x32xf32>, vector<2x1x32xf32>, vector<2x1x32xf32>, vector<2x1x32xf32>, vector<2x1x32xf32>, vector<2x1x32xf32> -> vector<2x8x32xf32>
    %217 = vector.shape_cast %216 : vector<2x8x32xf32> to vector<16x32xf32>
    %218 = arith.truncf %217 : vector<16x32xf32> to vector<16x32xbf16>
    %cst_52 = arith.constant dense<0.000000e+00> : vector<16x8xf32>
    %219 = tpu.matmul %218, %2, %cst_52 {dimension_numbers = #tpu.dot_dimension_numbers<[1], [0], [0], [1], [0, 0, 1, 1], [], []>} : vector<16x32xbf16>, vector<32x8xbf16>, vector<16x8xf32> -> vector<16x8xf32>
    %220 = vector.broadcast %5 : vector<1x8xf32> to vector<16x8xf32>
    %221 = arith.addf %219, %220 : vector<16x8xf32>
    %222 = vector.shape_cast %221 : vector<16x8xf32> to vector<2x8x8xf32>
    %c0_53 = arith.constant 0 : index
    %c0_54 = arith.constant 0 : index
    %c0_55 = arith.constant 0 : index
    %223 = vector.load %arg5[%c0_53, %c0_54, %c0_55] : memref<2x8x8xf32, #tpu.memory_space<vmem>>, vector<2x8x8xf32>
    tpu.vector_store %arg5[%c0_53, %c0_54, %c0_55], %222 {strides = array<i32>} : memref<2x8x8xf32, #tpu.memory_space<vmem>>, vector<2x8x8xf32>,
    return
  }
}

</mosaic_0001>

<bundles_post_ra>
// kernel: rnn_forward.1
= control target key start
LH: loop header
LB: loop body
LE: loop exit
PB: predicated region body
PF: predicated region fallthrough
CT: control target
= control target key end

     0   :  { %13 = vsyncpa [#allocation3], 0  ;;  %s1926_s0 = inlined_call_operand.hbm [shape: f32[2,8,16], index: 0, kind: input, shape index: {}]   ;;  %s1927_s1 = inlined_call_operand.hbm [shape: f32[1,2,32], index: 1, kind: input, shape index: {}, may-alias: {1,6}]   ;;  %s1928_s2 = inlined_call_operand.hbm [shape: f32[1,2,32], index: 2, kind: input, shape index: {}, may-alias: {2,7}]   ;;  %s1929_s3 = inlined_call_operand.hbm [shape: bf16[80,128], index: 3, kind: input, shape index: {}]   ;;  %s1930_s4 = inlined_call_operand.vmem [shape: f32[2,128], index: 4, kind: input, shape index: {}]   ;;  %s1931_s5 = inlined_call_operand.hbm [shape: f32[2,8,8], index: 5, kind: output, shape index: {0}]   ;;  %s1932_s6 = inlined_call_operand.hbm [shape: f32[1,2,32], index: 6, kind: output, shape index: {1}, may-alias: {1,6}]   ;;  %s1933_s7 = inlined_call_operand.hbm [shape: f32[1,2,32], index: 7, kind: output, shape index: {2}, may-alias: {2,7}]  }
   0x1   :  { %14 = vsyncpa [#allocation6], 0 }
   0x2   :  { %15 = vsyncpa [#allocation9], 0 }
   0x3   :  { %16 = vsyncpa [#allocation4], 0 }
   0x4   :  { %17 = vsyncpa [#allocation12], 0  ;;  %s1585_s24 = smov [#allocation5]   ;;  %s1586_s26 = smov [#allocation2]  }
   0x5   :  { %s36_s25 = sshll.u32 %s1585_s24, 4  ;;  %s23_s27 = sshll.u32 %s1586_s26, 4  ;;  %s37_s25 = int_to_ptr.vmem [resolvable:$true] %s36_s25  ;;  %s1643_s27 = int_to_ptr.vmem [resolvable:$true] %s23_s27 }
   0x6   :  { %s1421_s30 = scalar_lea.hbm %s1927_s1, 32 }
   0x7   :  { %p1422_p0 = scmp.ne.s32.totalorder %s1927_s1, %s1421_s30  ;;  %p1425_p1 = scmp.lt.u32.totalorder %s1421_s30, %s1927_s1 }
   0x9   :  { %p1427_p2 = pnand %p1425_p1, %p1422_p0 }
   0xb   :  { %1430 = shalt.err (!%p1427_p2)
}
   0xc   :  { %s1431_s12 = scalar_lea.vmem %s37_s25, 32  ;;  %p1436_p4 = scmp.lt.s32.totalorder %s37_s25, %s37_s25 }
   0xd   :  { %p1432_p3 = scmp.ne.s32.totalorder %s37_s25, %s1431_s12  ;;  %p1437_p5 = scmp.lt.s32.totalorder %s1431_s12, %s1431_s12 }
   0xf   :  { %p1438_p6 = por %p1437_p5, %p1436_p4 }
  0x11   :  { %p1439_p7 = pnand %p1438_p6, %p1432_p3 }
  0x13   :  { %1442 = shalt.err (!%p1439_p7)
}
  0x14   :  { %39 = dma.hbm_to_vmem [thread:$0]  %s1927_s1, 32, %s37_s25, [#allocation6]  }
  0x15   :  { %s1443_s17 = scalar_lea.hbm %s1926_s0, 256 }
  0x16   :  { %p1444_p8 = scmp.ne.s32.totalorder %s1926_s0, %s1443_s17  ;;  %p1447_p9 = scmp.lt.u32.totalorder %s1443_s17, %s1926_s0 }
  0x18   :  { %p1449_p10 = pnand %p1447_p9, %p1444_p8 }
  0x1a   :  { %1452 = shalt.err (!%p1449_p10)
}
  0x1b   :  { %s1453_s22 = scalar_lea.vmem %s1643_s27, 256  ;;  %p1458_p12 = scmp.lt.s32.totalorder %s1643_s27, %s1643_s27 }
  0x1c   :  { %p1454_p11 = scmp.ne.s32.totalorder %s1643_s27, %s1453_s22  ;;  %p1459_p13 = scmp.lt.s32.totalorder %s1453_s22, %s1453_s22 }
  0x1e   :  { %p1460_p0 = por %p1459_p13, %p1458_p12 }
  0x20   :  { %p1461_p1 = pnand %p1460_p0, %p1454_p11 }
  0x22   :  { %1464 = shalt.err (!%p1461_p1)
}
  0x23   :  { %s1587_s1 = smov 128   ;;  %s1588_s23 = smov 8  }
  0x24   :  { %29 = dma.hbm_to_vmem [thread:$0]  %s1926_s0, 256, %s1643_s27, [#allocation3], %s1587_s1, %s1587_s1, %s1588_s23  }
  0x25   :  { %s1589_s26 = smov [#allocation7]   ;;  %s1590_s29 = smov [#allocation8]  }
  0x26   :  { %s46_s28 = sshll.u32 %s1589_s26, 4  ;;  %s55_s30 = sshll.u32 %s1590_s29, 4  ;;  %s47_s28 = int_to_ptr.vmem [resolvable:$true] %s46_s28  ;;  %s1677_s30 = int_to_ptr.vmem [resolvable:$true] %s55_s30 }
  0x27   :  { %s1465_s10 = scalar_lea.hbm %s1928_s2, 32 }
  0x28   :  { %p1466_p2 = scmp.ne.s32.totalorder %s1928_s2, %s1465_s10  ;;  %p1469_p3 = scmp.lt.u32.totalorder %s1465_s10, %s1928_s2 }
  0x2a   :  { %p1471_p4 = pnand %p1469_p3, %p1466_p2 }
  0x2c   :  { %1474 = shalt.err (!%p1471_p4)
}
  0x2d   :  { %s1475_s0 = scalar_lea.vmem %s47_s28, 32  ;;  %p1480_p6 = scmp.lt.s32.totalorder %s47_s28, %s47_s28 }
  0x2e   :  { %p1476_p5 = scmp.ne.s32.totalorder %s47_s28, %s1475_s0  ;;  %p1481_p7 = scmp.lt.s32.totalorder %s1475_s0, %s1475_s0 }
  0x30   :  { %p1482_p8 = por %p1481_p7, %p1480_p6 }
  0x32   :  { %p1483_p9 = pnand %p1482_p8, %p1476_p5 }
  0x34   :  { %1486 = shalt.err (!%p1483_p9)
}
  0x35   :  { %49 = dma.hbm_to_vmem [thread:$0]  %s1928_s2, 32, %s47_s28, [#allocation6]  }
  0x36   :  { %s1487_s18 = scalar_lea.hbm %s1929_s3, 640 }
  0x37   :  { %p1488_p10 = scmp.ne.s32.totalorder %s1929_s3, %s1487_s18  ;;  %p1491_p11 = scmp.lt.u32.totalorder %s1487_s18, %s1929_s3 }
  0x39   :  { %p1493_p12 = pnand %p1491_p11, %p1488_p10 }
  0x3b   :  { %1496 = shalt.err (!%p1493_p12)
}
  0x3c   :  { %s1497_s24 = scalar_lea.vmem %s1677_s30, 640  ;;  %p1502_p0 = scmp.lt.s32.totalorder %s1677_s30, %s1677_s30 }
  0x3d   :  { %p1498_p13 = scmp.ne.s32.totalorder %s1677_s30, %s1497_s24  ;;  %p1503_p1 = scmp.lt.s32.totalorder %s1497_s24, %s1497_s24 }
  0x3f   :  { %p1504_p2 = por %p1503_p1, %p1502_p0 }
  0x41   :  { %p1505_p3 = pnand %p1504_p2, %p1498_p13 }
  0x43   :  { %1508 = shalt.err (!%p1505_p3)
}
  0x44   :  { %s1591_s2 = smov 64   ;;  %s1592_s25 = smov 4  }
  0x45   :  { %61 = dma.hbm_to_vmem [thread:$0]  %s1929_s3, 640, %s1677_s30, [#allocation9], %s1591_s2, %s1591_s2, %s1592_s25  }
  0x46   :  { %1575 = dma.done.wait [#allocation3], 256  }
  0x47   :  { %1576 = vsyncadd [#allocation3], 4294967040 }
  0x48   :  { %1577 = dma.done.wait [#allocation6], 64  }
  0x49   :  { %1578 = vsyncadd [#allocation6], 4294967232 }
  0x4a   :  { %1579 = dma.done.wait [#allocation9], 640  }
  0x4b   :  { %1580 = vsyncadd [#allocation9], 4294966656  ;;  %v1593_v0 = vmov 0.0   ;;  %vm1594_vm0 = vmmov 0   ;;  %v1368_v1 = vld [vmem:[#allocation8] sm:$0xff]   ;;  %v88_v2 = vld [vmem:[#allocation2] sm:$0xff]  ;;  %v91_v9 = vlaneseq }
  0x4c   :  { %1272 = vmatprep.subr.bf16.mxu0 %v1593_v0  ;;  %1274 = vmatprep.mubr.msk.bf16.mxu0 %vm1594_vm0, %v1593_v0  ;;  %v89_v3 = vld [vmem:[#allocation2 + $0x8] sm:$0xff]  ;;  %vm101_vm1 = vcmask 130048   ;;  %v1716_v5 = vld [vmem:[#allocation8 + $0x8] sm:$0xff]   ;;  %v212_v7 = vld [vmem:[#allocation5] sm:$0x3]  ;;  %vm227_vm2 = vcmask 261120  }
  0x4d   :  { %1278 = vmatprep.subr.bf16.mxu1 %v1593_v0  ;;  %1282 = vmatprep.mubr.msk.bf16.mxu1 %vm1594_vm0, %v1593_v0  ;;  %v90_v4 = vpack.c.bf16 %v89_v3, %v88_v2  ;;  %v1718_v6 = vld [vmem:[#allocation8 + $0x10] sm:$0xff]   ;;  %v214_v8 = vpack.c.bf16 %v212_v7, %v212_v7  ;;  %v1738_v10 = vshrl.u32 %v91_v9, 7  ;;  %v1595_v12 = vmov 1983009808   ;;  %v1746_v14 = vld [vmem:[%s1930_s4] sm:$0x3] }
  0x4e   :  { %1273 = vmatpush3.bf16.msra.mxu0 %v1368_v1  ;;  %1279 = vmatpush3.bf16.msra.mxu1 %v1716_v5  ;;  %v148_v13 = vunpack.c.l.s4 %v1595_v12  ;;  %v1596_v15 = vmov 1934713408   ;;  %v213_v53 = vld [vmem:[#allocation7] sm:$0x3]  ;;  %s1597_s4 = smov 32   ;;  %vm1078_vm3 = vcmask 1040384  }
  0x4f   :  { %1286 = vmatprep.subr.bf16.mxu0 %v1593_v0  ;;  %1280 = vmatprep.subr.bf16.mxu1 %v1593_v0  ;;  %v1741_v11 = vsub.s32 0, %v1738_v10  ;;  %v179_v16 = vunpack.c.l.s4 %v1596_v15  ;;  %vm1081_vm4 = vcmask 1041408   ;;  %vm1084_vm5 = vcmask 1042432   ;;  %s1599_s30 = smov 96   ;;  %s1600_s8 = smov [#allocation11]  }
  0x50   :  { %v149_v18 = vunpack.c.0.s8 %v148_v13  ;;  %vm1087_vm6 = vcmask 1043456   ;;  %vm1090_vm7 = vcmask 1044480   ;;  %vm1093_vm8 = vcmask 1045504   ;;  %s1184_s9 = sshll.u32 %s1600_s8, 4  ;;  %s1185_s9 = int_to_ptr.vmem [resolvable:$true] %s1184_s9 }
  0x51   :  { %1275 = vmatmul.mubr.msk.bf16.vlgmr.msra.gmra.mrb[0].mxu0 %vm101_vm1, %v90_v4  ;;  %v94_v17 = vrot.slane %v1746_v14, %v1741_v11  ;;  %v180_v20 = vunpack.c.0.s8 %v179_v16  ;;  %vm1096_vm9 = vcmask 1046528   ;;  %vm816_vm10 = vcmask 254976   ;;  %s1509_s10 = scalar_lea.vmem %s1185_s9, 32  ;;  %p1514_p5 = scmp.lt.s32.totalorder %s1185_s9, %s1185_s9 }
  0x52   :  { %1287 = vmatpush3.bf16.msra.mxu0 %v1716_v5  ;;  %1290 = vmatprep.mubr.msk.bf16.mxu0 %vm1594_vm0, %v1593_v0  ;;  %v152_v22 = vsub.s32 %v149_v18, %v1738_v10  ;;  %p1510_p4 = scmp.ne.s32.totalorder %s1185_s9, %s1509_s10  ;;  %p1515_p6 = scmp.lt.s32.totalorder %s1509_s10, %s1509_s10 }
  0x53   :  { %1288 = vmatprep.subr.bf16.mxu0 %v1593_v0  ;;  %1281 = vmatpush3.bf16.msra.mxu1 %v1718_v6  ;;  %v183_v28 = vsub.s32 %v180_v20, %v1738_v10 }
  0x54   :  { %1294 = vmatprep.subr.bf16.mxu1 %v1593_v0  ;;  %p1516_p7 = por %p1515_p6, %p1514_p5 }
  0x56   :  { %1289 = vmatpush3.bf16.msra.mxu0 %v1718_v6  ;;  %1283 = vmatmul.mubr.msk.bf16.vlgmr.msra.gmra.mrb[0].mxu1 %vm227_vm2, %v214_v8  ;;  %p1517_p8 = pnand %p1516_p7, %p1510_p4 }
  0x57   :  { %1302 = vmatprep.subr.bf16.mxu0 %v1593_v0  ;;  %1295 = vmatpush3.bf16.msra.mxu1 %v1716_v5 }
  0x58   :  { %1298 = vmatprep.mubr.msk.bf16.mxu1 %vm1594_vm0, %v1593_v0  ;;  %1296 = vmatprep.subr.bf16.mxu1 %v1593_v0 }
  0x5b   :  { %1297 = vmatpush3.bf16.msra.mxu1 %v1718_v6 }
  0x5c   :  { %1310 = vmatprep.subr.bf16.mxu1 %v1593_v0 }
 0x124   :  { %v139_v19 = vpop.f32.mrb[0].mxu0 }
 0x125   :  { %v140_v21 = vadd.f32 %v139_v19, %v94_v17  ;;  %v1276_v23 = vpop.f32.mrb[1].mxu0 }
 0x126   :  { %v142_v24 = vpop.f32.mrb[2].mxu0 }
 0x127   :  { %v146_v25 = vcombine.high %v140_v21, %v1593_v0  ;;  %v143_v26 = vadd.f32 %v142_v24, %v94_v17  ;;  %v1277_v27 = vpop.f32.mrb[3].mxu0  ;;  %v153_v29 = vrot.slane %v140_v21, %v152_v22 }
 0x129   :  { %v160_v30 = vrot.slane %v146_v25, %v152_v22  ;;  %v161_v31 = vcombine.high %v143_v26, %v1593_v0  ;;  %v168_v32 = vrot.slane %v143_v26, %v152_v22  ;;  %v265_v33 = vpop.f32.mrb[0].mxu1  ;;  %v1598_v25 = vmov 1966171168  }
 0x12a   :  { %v1284_v36 = vpop.f32.mrb[1].mxu1  ;;  %v825_v26 = vunpack.c.l.s4 %v1598_v25 }
 0x12b   :  { %v175_v34 = vrot.slane %v161_v31, %v152_v22  ;;  %v176_v35 = vcombine.low %v153_v29, %v168_v32  ;;  %v177_v37 = vcombine.high %v153_v29, %v168_v32  ;;  %v268_v38 = vpop.f32.mrb[2].mxu1 }
 0x12c   :  { %v1285_v40 = vpop.f32.mrb[3].mxu1  ;;  %v826_v27 = vunpack.c.0.s8 %v825_v26 }
 0x12d   :  { %v184_v39 = vrot.slane %v176_v35, %v183_v28  ;;  %v1754_v41 = vrot.slane %v177_v37, %v183_v28  ;;  %v192_v42 = vcombine.low %v160_v30, %v175_v34  ;;  %v193_v43 = vcombine.high %v160_v30, %v175_v34 }
 0x12f   :  { %v271_v44 = vadd.f32 %v265_v33, %v184_v39  ;;  %v1756_v45 = vrot.slane %v192_v42, %v183_v28  ;;  %v1758_v46 = vrot.slane %v193_v43, %v183_v28  ;;  %v208_v2 = vcombine.high %v184_v39, %v1593_v0 }
 0x130   :  { %v1777_v28 = vsub.s32 %v826_v27, %v1738_v10 }
 0x131   :  { %v1217_v47 = vmul.f32 -1.442695, %v271_v44 }
 0x133   :  { %1373 = vpow2.f32 %v1217_v47 }
 0x13d   :  { %v1374_v48 = vpop.eup %1373 }
 0x13e   :  { %v275_v49 = vadd.f32 1.0, %v1374_v48 }
 0x140   :  { %1375 = vrcp.f32 %v275_v49 }
 0x14a   :  { %v1376_v50 = vpop.eup %1375 }
 0x14b   :  { %v278_v51 = vmul.f32 2.0, %v1376_v50 }
 0x14d   :  { %v1218_v52 = vadd.f32 -1.0, %v278_v51 }
 0x14f   :  { %286 = vrot.lane.b32.xlu0 %v1218_v52, %s1591_s2 }
 0x153   :  { %281 = vrot.lane.b32.xlu0 %v213_v53, %s1597_s4 }
 0x1c1   :  { %v287_v54 = vpop.permute.xlu0 %286 }
 0x1c2   :  { %v289_v55 = vmul.f32 %v1376_v50, %v287_v54 }
 0x1c4   :  { %291 = vrot.lane.b32.xlu1 %v289_v55, %s1597_s4 }
 0x1c5   :  { %v282_v56 = vpop.permute.xlu0 %281 }
 0x1c6   :  { %v284_v57 = vmul.f32 %v1376_v50, %v282_v56 }
 0x236   :  { %v292_v58 = vpop.permute.xlu1 %291 }
 0x237   :  { %v294_v59 = vadd.f32 %v292_v58, %v284_v57 }
 0x239   :  { %1377 = vtanh.f32 %v294_v59 }
 0x243   :  { %v1378_v60 = vpop.eup %1377 }
 0x244   :  { %297 = vrot.lane.b32.xlu1 %v1378_v60, %s1591_s2 }
 0x2b6   :  { %v298_v61 = vpop.permute.xlu1 %297 }
 0x2b7   :  { %v300_v62 = vmul.f32 %v1376_v50, %v298_v61 }
 0x2b9   :  { %v301_v63 = vpack.c.bf16 %v300_v62, %v300_v62  ;;  %v830_v30 = vrot.slane %v300_v62, %v1777_v28 }
 0x2bb   :  { %303 = vrot.lane.b32.xlu0 %v301_v63, %s1597_s4  ;;  %v831_v34 = vcombine.high %v830_v30, %v830_v30  ;;  %v838_v37 = vrot.slane %v830_v30, %v1777_v28 }
 0x2bd   :  { %v845_v40 = vrot.slane %v831_v34, %v1777_v28 }
 0x32d   :  { %v304_v1 = vpop.permute.xlu0 %303 }
 0x32e   :  { %1291 = vmatmul.mubr.msk.bf16.vlgmr.msra.gmra.mrb[4].mxu0 %vm227_vm2, %v304_v1 }
 0x32f   :  { %1303 = vmatpush3.bf16.msra.mxu0 %v1716_v5  ;;  %1306 = vmatprep.mubr.msk.bf16.mxu0 %vm1594_vm0, %v1593_v0 }
 0x330   :  { %1304 = vmatprep.subr.bf16.mxu0 %v1593_v0 }
 0x333   :  { %1305 = vmatpush3.bf16.msra.mxu0 %v1718_v6 }
 0x334   :  { %1318 = vmatprep.subr.bf16.mxu0 %v1593_v0 }
 0x401   :  { %v342_v3 = vpop.f32.mrb[4].mxu0 }
 0x402   :  { %v348_v4 = vadd.f32 %v342_v3, %v208_v2  ;;  %v1292_v7 = vpop.f32.mrb[5].mxu0 }
 0x403   :  { %v345_v8 = vpop.f32.mrb[6].mxu0 }
 0x404   :  { %v1220_v9 = vmul.f32 -1.442695, %v348_v4  ;;  %v1293_v12 = vpop.f32.mrb[7].mxu0 }
 0x406   :  { %1379 = vpow2.f32 %v1220_v9 }
 0x410   :  { %v1380_v13 = vpop.eup %1379 }
 0x411   :  { %v352_v15 = vadd.f32 1.0, %v1380_v13 }
 0x413   :  { %1381 = vrcp.f32 %v352_v15 }
 0x41d   :  { %v1382_v16 = vpop.eup %1381 }
 0x41e   :  { %v355_v17 = vmul.f32 2.0, %v1382_v16  ;;  %v357_v21 = vmul.f32 %v1382_v16, %v294_v59 }
 0x420   :  { %v1221_v18 = vadd.f32 -1.0, %v355_v17 }
 0x422   :  { %359 = vrot.lane.b32.xlu1 %v1221_v18, %s1591_s2 }
 0x494   :  { %v360_v19 = vpop.permute.xlu1 %359 }
 0x495   :  { %v362_v20 = vmul.f32 %v1382_v16, %v360_v19  ;;  %v209_v19 = vcombine.high %v1754_v41, %v1593_v0 }
 0x497   :  { %364 = vrot.lane.b32.xlu0 %v362_v20, %s1597_s4 }
 0x509   :  { %v365_v22 = vpop.permute.xlu0 %364 }
 0x50a   :  { %v367_v23 = vadd.f32 %v365_v22, %v357_v21 }
 0x50c   :  { %1383 = vtanh.f32 %v367_v23 }
 0x516   :  { %v1384_v24 = vpop.eup %1383 }
 0x517   :  { %370 = vrot.lane.b32.xlu1 %v1384_v24, %s1591_s2 }
 0x589   :  { %v371_v29 = vpop.permute.xlu1 %370 }
 0x58a   :  { %v373_v31 = vmul.f32 %v1382_v16, %v371_v29 }
 0x58c   :  { %v374_v32 = vpack.c.bf16 %v373_v31, %v373_v31  ;;  %v855_v33 = vrot.slane %v373_v31, %v1777_v28 }
 0x58e   :  { %v856_v35 = vcombine.high %v855_v33, %v855_v33  ;;  %v863_v36 = vrot.slane %v855_v33, %v1777_v28  ;;  %376 = vrot.lane.b32.xlu0 %v374_v32, %s1597_s4 }
 0x590   :  { %v870_v38 = vrot.slane %v856_v35, %v1777_v28  ;;  %v1011_v39 = vrot.slane %v863_v36, %v1741_v11 }
 0x592   :  { %v1015_v42 = vrot.slane %v870_v38, %v1741_v11  ;;  %v1079_v43 = vsel %vm1078_vm3, %v838_v37, %v1011_v39 }
 0x594   :  { %v1080_v44 = vsel %vm1078_vm3, %v845_v40, %v1015_v42 }
 0x600   :  { %v377_v47 = vpop.permute.xlu0 %376 }
 0x601   :  { %1299 = vmatmul.mubr.msk.bf16.vlgmr.msra.gmra.mrb[4].mxu1 %vm227_vm2, %v377_v47 }
 0x602   :  { %1311 = vmatpush3.bf16.msra.mxu1 %v1716_v5  ;;  %1314 = vmatprep.mubr.msk.bf16.mxu1 %vm1594_vm0, %v1593_v0 }
 0x603   :  { %1312 = vmatprep.subr.bf16.mxu1 %v1593_v0 }
 0x606   :  { %1313 = vmatpush3.bf16.msra.mxu1 %v1718_v6 }
 0x607   :  { %1326 = vmatprep.subr.bf16.mxu1 %v1593_v0 }
 0x6d4   :  { %v415_v48 = vpop.f32.mrb[4].mxu1 }
 0x6d5   :  { %v421_v49 = vadd.f32 %v415_v48, %v1754_v41  ;;  %v1300_v50 = vpop.f32.mrb[5].mxu1 }
 0x6d6   :  { %v418_v51 = vpop.f32.mrb[6].mxu1 }
 0x6d7   :  { %v1223_v52 = vmul.f32 -1.442695, %v421_v49  ;;  %v1301_v53 = vpop.f32.mrb[7].mxu1 }
 0x6d9   :  { %1385 = vpow2.f32 %v1223_v52 }
 0x6e3   :  { %v1386_v54 = vpop.eup %1385 }
 0x6e4   :  { %v425_v55 = vadd.f32 1.0, %v1386_v54 }
 0x6e6   :  { %1387 = vrcp.f32 %v425_v55 }
 0x6f0   :  { %v1388_v56 = vpop.eup %1387 }
 0x6f1   :  { %v428_v57 = vmul.f32 2.0, %v1388_v56  ;;  %v430_v61 = vmul.f32 %v1388_v56, %v367_v23 }
 0x6f3   :  { %v1224_v58 = vadd.f32 -1.0, %v428_v57 }
 0x6f5   :  { %432 = vrot.lane.b32.xlu1 %v1224_v58, %s1591_s2 }
 0x767   :  { %v433_v59 = vpop.permute.xlu1 %432 }
 0x768   :  { %v435_v60 = vmul.f32 %v1388_v56, %v433_v59 }
 0x76a   :  { %437 = vrot.lane.b32.xlu0 %v435_v60, %s1597_s4 }
 0x7dc   :  { %v438_v62 = vpop.permute.xlu0 %437 }
 0x7dd   :  { %v440_v63 = vadd.f32 %v438_v62, %v430_v61 }
 0x7df   :  { %1389 = vtanh.f32 %v440_v63 }
 0x7e9   :  { %v1390_v1 = vpop.eup %1389 }
 0x7ea   :  { %443 = vrot.lane.b32.xlu1 %v1390_v1, %s1591_s2 }
 0x85c   :  { %v444_v2 = vpop.permute.xlu1 %443 }
 0x85d   :  { %v446_v3 = vmul.f32 %v1388_v56, %v444_v2 }
 0x85f   :  { %v447_v4 = vpack.c.bf16 %v446_v3, %v446_v3  ;;  %v878_v7 = vrot.slane %v446_v3, %v1777_v28 }
 0x861   :  { %v879_v8 = vcombine.high %v878_v7, %v878_v7  ;;  %v886_v9 = vrot.slane %v878_v7, %v1777_v28  ;;  %449 = vrot.lane.b32.xlu0 %v447_v4, %s1597_s4 }
 0x863   :  { %v893_v12 = vrot.slane %v879_v8, %v1777_v28  ;;  %v1021_v13 = vrot.slane %v886_v9, %v1741_v11 }
 0x865   :  { %v1025_v15 = vrot.slane %v893_v12, %v1741_v11  ;;  %v1082_v16 = vsel %vm1081_vm4, %v1079_v43, %v1021_v13 }
 0x867   :  { %v1083_v17 = vsel %vm1081_vm4, %v1080_v44, %v1025_v15 }
 0x8d3   :  { %v450_v18 = vpop.permute.xlu0 %449 }
 0x8d4   :  { %1307 = vmatmul.mubr.msk.bf16.vlgmr.msra.gmra.mrb[8].mxu0 %vm227_vm2, %v450_v18 }
 0x8d5   :  { %1319 = vmatpush3.bf16.msra.mxu0 %v1716_v5  ;;  %1322 = vmatprep.mubr.msk.bf16.mxu0 %vm1594_vm0, %v1593_v0 }
 0x8d6   :  { %1320 = vmatprep.subr.bf16.mxu0 %v1593_v0 }
 0x8d9   :  { %1321 = vmatpush3.bf16.msra.mxu0 %v1718_v6 }
 0x8da   :  { %1334 = vmatprep.subr.bf16.mxu0 %v1593_v0 }
 0x9a7   :  { %v488_v20 = vpop.f32.mrb[8].mxu0 }
 0x9a8   :  { %v494_v21 = vadd.f32 %v488_v20, %v209_v19  ;;  %v1308_v22 = vpop.f32.mrb[9].mxu0 }
 0x9a9   :  { %v491_v23 = vpop.f32.mrb[10].mxu0 }
 0x9aa   :  { %v1226_v24 = vmul.f32 -1.442695, %v494_v21  ;;  %v1309_v25 = vpop.f32.mrb[11].mxu0  ;;  %v210_v23 = vcombine.high %v1756_v45, %v1593_v0 }
 0x9ac   :  { %1391 = vpow2.f32 %v1226_v24 }
 0x9b6   :  { %v1392_v26 = vpop.eup %1391 }
 0x9b7   :  { %v498_v27 = vadd.f32 1.0, %v1392_v26 }
 0x9b9   :  { %1393 = vrcp.f32 %v498_v27 }
 0x9c3   :  { %v1394_v29 = vpop.eup %1393 }
 0x9c4   :  { %v501_v30 = vmul.f32 2.0, %v1394_v29  ;;  %v503_v41 = vmul.f32 %v1394_v29, %v440_v63 }
 0x9c6   :  { %v1227_v31 = vadd.f32 -1.0, %v501_v30 }
 0x9c8   :  { %505 = vrot.lane.b32.xlu1 %v1227_v31, %s1591_s2 }
 0xa3a   :  { %v506_v32 = vpop.permute.xlu1 %505 }
 0xa3b   :  { %v508_v33 = vmul.f32 %v1394_v29, %v506_v32 }
 0xa3d   :  { %510 = vrot.lane.b32.xlu0 %v508_v33, %s1597_s4 }
 0xaaf   :  { %v511_v34 = vpop.permute.xlu0 %510 }
 0xab0   :  { %v513_v35 = vadd.f32 %v511_v34, %v503_v41 }
 0xab2   :  { %1395 = vtanh.f32 %v513_v35 }
 0xabc   :  { %v1396_v36 = vpop.eup %1395 }
 0xabd   :  { %516 = vrot.lane.b32.xlu1 %v1396_v36, %s1591_s2 }
 0xb2f   :  { %v517_v37 = vpop.permute.xlu1 %516 }
 0xb30   :  { %v519_v38 = vmul.f32 %v1394_v29, %v517_v37 }
 0xb32   :  { %v520_v39 = vpack.c.bf16 %v519_v38, %v519_v38  ;;  %v901_v40 = vrot.slane %v519_v38, %v1777_v28 }
 0xb34   :  { %v902_v42 = vcombine.high %v901_v40, %v901_v40  ;;  %v909_v43 = vrot.slane %v901_v40, %v1777_v28  ;;  %522 = vrot.lane.b32.xlu0 %v520_v39, %s1597_s4 }
 0xb36   :  { %v916_v44 = vrot.slane %v902_v42, %v1777_v28  ;;  %v1031_v47 = vrot.slane %v909_v43, %v1741_v11 }
 0xb38   :  { %v1035_v48 = vrot.slane %v916_v44, %v1741_v11  ;;  %v1085_v49 = vsel %vm1084_vm5, %v1082_v16, %v1031_v47 }
 0xb3a   :  { %v1086_v50 = vsel %vm1084_vm5, %v1083_v17, %v1035_v48 }
 0xba6   :  { %v523_v51 = vpop.permute.xlu0 %522 }
 0xba7   :  { %1315 = vmatmul.mubr.msk.bf16.vlgmr.msra.gmra.mrb[8].mxu1 %vm227_vm2, %v523_v51 }
 0xba8   :  { %1327 = vmatpush3.bf16.msra.mxu1 %v1716_v5  ;;  %1330 = vmatprep.mubr.msk.bf16.mxu1 %vm1594_vm0, %v1593_v0 }
 0xba9   :  { %1328 = vmatprep.subr.bf16.mxu1 %v1593_v0 }
 0xbac   :  { %1329 = vmatpush3.bf16.msra.mxu1 %v1718_v6 }
 0xbad   :  { %1342 = vmatprep.subr.bf16.mxu1 %v1593_v0 }
 0xc7a   :  { %v561_v52 = vpop.f32.mrb[8].mxu1 }
 0xc7b   :  { %v567_v53 = vadd.f32 %v561_v52, %v1756_v45  ;;  %v1316_v54 = vpop.f32.mrb[9].mxu1 }
 0xc7c   :  { %v564_v55 = vpop.f32.mrb[10].mxu1 }
 0xc7d   :  { %v1229_v56 = vmul.f32 -1.442695, %v567_v53  ;;  %v1317_v57 = vpop.f32.mrb[11].mxu1 }
 0xc7f   :  { %1397 = vpow2.f32 %v1229_v56 }
 0xc89   :  { %v1398_v58 = vpop.eup %1397 }
 0xc8a   :  { %v571_v59 = vadd.f32 1.0, %v1398_v58 }
 0xc8c   :  { %1399 = vrcp.f32 %v571_v59 }
 0xc96   :  { %v1400_v60 = vpop.eup %1399 }
 0xc97   :  { %v574_v61 = vmul.f32 2.0, %v1400_v60  ;;  %v576_v2 = vmul.f32 %v1400_v60, %v513_v35 }
 0xc99   :  { %v1230_v62 = vadd.f32 -1.0, %v574_v61 }
 0xc9b   :  { %578 = vrot.lane.b32.xlu1 %v1230_v62, %s1591_s2 }
 0xd0d   :  { %v579_v63 = vpop.permute.xlu1 %578 }
 0xd0e   :  { %v581_v1 = vmul.f32 %v1400_v60, %v579_v63 }
 0xd10   :  { %583 = vrot.lane.b32.xlu0 %v581_v1, %s1597_s4 }
 0xd82   :  { %v584_v3 = vpop.permute.xlu0 %583 }
 0xd83   :  { %v586_v4 = vadd.f32 %v584_v3, %v576_v2 }
 0xd85   :  { %1401 = vtanh.f32 %v586_v4 }
 0xd8f   :  { %v1402_v7 = vpop.eup %1401 }
 0xd90   :  { %589 = vrot.lane.b32.xlu1 %v1402_v7, %s1591_s2 }
 0xe02   :  { %v590_v8 = vpop.permute.xlu1 %589 }
 0xe03   :  { %v592_v9 = vmul.f32 %v1400_v60, %v590_v8 }
 0xe05   :  { %v593_v12 = vpack.c.bf16 %v592_v9, %v592_v9  ;;  %v924_v13 = vrot.slane %v592_v9, %v1777_v28 }
 0xe07   :  { %v925_v15 = vcombine.high %v924_v13, %v924_v13  ;;  %v932_v16 = vrot.slane %v924_v13, %v1777_v28  ;;  %595 = vrot.lane.b32.xlu0 %v593_v12, %s1597_s4 }
 0xe09   :  { %v939_v17 = vrot.slane %v925_v15, %v1777_v28  ;;  %v1041_v18 = vrot.slane %v932_v16, %v1741_v11 }
 0xe0b   :  { %v1045_v19 = vrot.slane %v939_v17, %v1741_v11  ;;  %v1088_v20 = vsel %vm1087_vm6, %v1085_v49, %v1041_v18 }
 0xe0d   :  { %v1089_v21 = vsel %vm1087_vm6, %v1086_v50, %v1045_v19 }
 0xe79   :  { %v596_v22 = vpop.permute.xlu0 %595 }
 0xe7a   :  { %1323 = vmatmul.mubr.msk.bf16.vlgmr.msra.gmra.mrb[12].mxu0 %vm227_vm2, %v596_v22 }
 0xe7b   :  { %1335 = vmatpush3.bf16.msra.mxu0 %v1716_v5  ;;  %1338 = vmatprep.mubr.msk.bf16.mxu0 %vm1594_vm0, %v1593_v0 }
 0xe7c   :  { %1336 = vmatprep.subr.bf16.mxu0 %v1593_v0 }
 0xe7f   :  { %1337 = vmatpush3.bf16.msra.mxu0 %v1718_v6 }
 0xf4d   :  { %v634_v24 = vpop.f32.mrb[12].mxu0 }
 0xf4e   :  { %v640_v25 = vadd.f32 %v634_v24, %v210_v23  ;;  %v1324_v26 = vpop.f32.mrb[13].mxu0  ;;  %v211_v24 = vcombine.high %v1758_v46, %v1593_v0 }
 0xf4f   :  { %v637_v27 = vpop.f32.mrb[14].mxu0 }
 0xf50   :  { %v1232_v29 = vmul.f32 -1.442695, %v640_v25  ;;  %v1325_v30 = vpop.f32.mrb[15].mxu0 }
 0xf52   :  { %1403 = vpow2.f32 %v1232_v29 }
 0xf5c   :  { %v1404_v31 = vpop.eup %1403 }
 0xf5d   :  { %v644_v32 = vadd.f32 1.0, %v1404_v31 }
 0xf5f   :  { %1405 = vrcp.f32 %v644_v32 }
 0xf69   :  { %v1406_v5 = vpop.eup %1405 }
 0xf6a   :  { %v647_v33 = vmul.f32 2.0, %v1406_v5  ;;  %v649_v45 = vmul.f32 %v1406_v5, %v586_v4 }
 0xf6c   :  { %v1233_v41 = vadd.f32 -1.0, %v647_v33 }
 0xf6e   :  { %651 = vrot.lane.b32.xlu1 %v1233_v41, %s1591_s2 }
 0xfe0   :  { %v652_v34 = vpop.permute.xlu1 %651 }
 0xfe1   :  { %v654_v6 = vmul.f32 %v1406_v5, %v652_v34 }
 0xfe3   :  { %656 = vrot.lane.b32.xlu0 %v654_v6, %s1597_s4 }
0x1055   :  { %v657_v35 = vpop.permute.xlu0 %656 }
0x1056   :  { %v659_v36 = vadd.f32 %v657_v35, %v649_v45 }
0x1058   :  { %1407 = vtanh.f32 %v659_v36 }
0x1062   :  { %v1408_v37 = vpop.eup %1407 }
0x1063   :  { %662 = vrot.lane.b32.xlu1 %v1408_v37, %s1591_s2 }
0x10d5   :  { %v663_v38 = vpop.permute.xlu1 %662 }
0x10d6   :  { %v665_v39 = vmul.f32 %v1406_v5, %v663_v38  ;;  %v1371_v38 = vld [vmem:[#allocation8 + $0x18] sm:$0xff]  }
0x10d8   :  { %v666_v40 = vpack.c.bf16 %v665_v39, %v665_v39  ;;  %v947_v42 = vrot.slane %v665_v39, %v1777_v28  ;;  %v1372_v39 = vld [vmem:[#allocation8 + $0x20] sm:$0xff]  }
0x10da   :  { %v948_v43 = vcombine.high %v947_v42, %v947_v42  ;;  %v955_v44 = vrot.slane %v947_v42, %v1777_v28  ;;  %668 = vrot.lane.b32.xlu0 %v666_v40, %s1597_s4 }
0x10dc   :  { %v962_v47 = vrot.slane %v948_v43, %v1777_v28  ;;  %v1051_v48 = vrot.slane %v955_v44, %v1741_v11 }
0x10de   :  { %v1055_v49 = vrot.slane %v962_v47, %v1741_v11  ;;  %v1091_v50 = vsel %vm1090_vm7, %v1088_v20, %v1051_v48 }
0x10e0   :  { %v1092_v51 = vsel %vm1090_vm7, %v1089_v21, %v1055_v49 }
0x114c   :  { %v669_v52 = vpop.permute.xlu0 %668 }
0x114d   :  { %1331 = vmatmul.mubr.msk.bf16.vlgmr.msra.gmra.mrb[12].mxu1 %vm227_vm2, %v669_v52 }
0x114e   :  { %1346 = vmatprep.mubr.msk.bf16.mxu1 %vm1594_vm0, %v1593_v0  ;;  %1343 = vmatpush3.bf16.msra.mxu1 %v1371_v38 }
0x114f   :  { %1344 = vmatprep.subr.bf16.mxu1 %v1593_v0 }
0x1152   :  { %1345 = vmatpush3.bf16.msra.mxu1 %v1372_v39 }
0x1220   :  { %v707_v53 = vpop.f32.mrb[12].mxu1 }
0x1221   :  { %v713_v54 = vadd.f32 %v707_v53, %v1758_v46  ;;  %v1332_v55 = vpop.f32.mrb[13].mxu1 }
0x1222   :  { %v710_v56 = vpop.f32.mrb[14].mxu1 }
0x1223   :  { %v1235_v57 = vmul.f32 -1.442695, %v713_v54  ;;  %v1333_v58 = vpop.f32.mrb[15].mxu1 }
0x1225   :  { %1409 = vpow2.f32 %v1235_v57 }
0x122f   :  { %v1410_v59 = vpop.eup %1409 }
0x1230   :  { %v717_v60 = vadd.f32 1.0, %v1410_v59 }
0x1232   :  { %1411 = vrcp.f32 %v717_v60 }
0x123c   :  { %v1412_v61 = vpop.eup %1411 }
0x123d   :  { %v720_v62 = vmul.f32 2.0, %v1412_v61  ;;  %v722_v3 = vmul.f32 %v1412_v61, %v659_v36 }
0x123f   :  { %v1236_v63 = vadd.f32 -1.0, %v720_v62 }
0x1241   :  { %724 = vrot.lane.b32.xlu1 %v1236_v63, %s1591_s2 }
0x12b3   :  { %v725_v1 = vpop.permute.xlu1 %724 }
0x12b4   :  { %v727_v2 = vmul.f32 %v1412_v61, %v725_v1 }
0x12b6   :  { %729 = vrot.lane.b32.xlu0 %v727_v2, %s1597_s4 }
0x1328   :  { %v730_v4 = vpop.permute.xlu0 %729 }
0x1329   :  { %v732_v7 = vadd.f32 %v730_v4, %v722_v3 }
0x132b   :  { %1413 = vtanh.f32 %v732_v7 }
0x1335   :  { %v1414_v8 = vpop.eup %1413 }
0x1336   :  { %735 = vrot.lane.b32.xlu1 %v1414_v8, %s1591_s2 }
0x13a8   :  { %v736_v9 = vpop.permute.xlu1 %735 }
0x13a9   :  { %v738_v12 = vmul.f32 %v1412_v61, %v736_v9 }
0x13ab   :  { %v739_v13 = vpack.c.bf16 %v738_v12, %v738_v12  ;;  %v970_v15 = vrot.slane %v738_v12, %v1777_v28 }
0x13ad   :  { %v971_v16 = vcombine.high %v970_v15, %v970_v15  ;;  %v978_v17 = vrot.slane %v970_v15, %v1777_v28  ;;  %741 = vrot.lane.b32.xlu0 %v739_v13, %s1597_s4 }
0x13af   :  { %v985_v18 = vrot.slane %v971_v16, %v1777_v28  ;;  %v1061_v19 = vrot.slane %v978_v17, %v1741_v11 }
0x13b1   :  { %v1065_v20 = vrot.slane %v985_v18, %v1741_v11  ;;  %v1094_v21 = vsel %vm1093_vm8, %v1091_v50, %v1061_v19 }
0x13b3   :  { %v1095_v22 = vsel %vm1093_vm8, %v1092_v51, %v1065_v20 }
0x141f   :  { %v742_v23 = vpop.permute.xlu0 %741 }
0x1420   :  { %1339 = vmatmul.mubr.msk.bf16.vlgmr.msra.gmra.mrb[16].mxu0 %vm227_vm2, %v742_v23 }
0x14f3   :  { %v780_v25 = vpop.f32.mrb[16].mxu0 }
0x14f4   :  { %v786_v26 = vadd.f32 %v780_v25, %v211_v24  ;;  %v1340_v27 = vpop.f32.mrb[17].mxu0 }
0x14f5   :  { %v783_v29 = vpop.f32.mrb[18].mxu0 }
0x14f6   :  { %v1238_v30 = vmul.f32 -1.442695, %v786_v26  ;;  %v1341_v31 = vpop.f32.mrb[19].mxu0 }
0x14f8   :  { %1415 = vpow2.f32 %v1238_v30 }
0x1502   :  { %v1416_v32 = vpop.eup %1415 }
0x1503   :  { %v790_v5 = vadd.f32 1.0, %v1416_v32 }
0x1505   :  { %1417 = vrcp.f32 %v790_v5 }
0x150f   :  { %v1418_v33 = vpop.eup %1417 }
0x1510   :  { %v793_v41 = vmul.f32 2.0, %v1418_v33  ;;  %v795_v46 = vmul.f32 %v1418_v33, %v732_v7 }
0x1512   :  { %v1239_v34 = vadd.f32 -1.0, %v793_v41 }
0x1514   :  { %797 = vrot.lane.b32.xlu1 %v1239_v34, %s1591_s2 }
0x1586   :  { %v798_v6 = vpop.permute.xlu1 %797 }
0x1587   :  { %v800_v45 = vmul.f32 %v1418_v33, %v798_v6 }
0x1589   :  { %802 = vrot.lane.b32.xlu0 %v800_v45, %s1597_s4 }
0x15fb   :  { %v803_v35 = vpop.permute.xlu0 %802 }
0x15fc   :  { %v805_v36 = vadd.f32 %v803_v35, %v795_v46 }
0x15fe   :  { %1419 = vtanh.f32 %v805_v36 }
0x1608   :  { %v1420_v37 = vpop.eup %1419 }
0x1609   :  { %808 = vrot.lane.b32.xlu1 %v1420_v37, %s1591_s2 }
0x167b   :  { %v809_v40 = vpop.permute.xlu1 %808 }
0x167c   :  { %v811_v42 = vmul.f32 %v1418_v33, %v809_v40 }
0x167e   :  { %v992_v43 = vrot.slane %v811_v42, %v1777_v28  ;;  %813 = vrot.lane.b32.xlu1 %v811_v42, %s1597_s4 }
0x1680   :  { %v993_v44 = vcombine.high %v992_v43, %v992_v43  ;;  %v1000_v47 = vrot.slane %v992_v43, %v1777_v28 }
0x1682   :  { %v1007_v48 = vrot.slane %v993_v44, %v1777_v28  ;;  %v1071_v49 = vrot.slane %v1000_v47, %v1741_v11 }
0x1684   :  { %v1075_v50 = vrot.slane %v1007_v48, %v1741_v11  ;;  %v1097_v51 = vsel %vm1096_vm9, %v1094_v21, %v1071_v49 }
0x1686   :  { %v1098_v52 = vsel %vm1096_vm9, %v1095_v22, %v1075_v50 }
0x1687   :  { %v1099_v0 = vpack.c.bf16 %v1098_v52, %v1097_v51 }
0x1689   :  { %1105 = vrot.lane.b32.xlu0 %v1099_v0, %s1597_s4 }
0x168d   :  { %819 = vrot.lane.b32.xlu0 %v805_v36, %s1599_s30 }
0x16f0   :  { %v814_v53 = vpop.permute.xlu1 %813 }
0x16f1   :  { %817 = vst.msk [vmem:[#allocation11] sm:$0x3] %vm816_vm10, %v814_v53 }
0x16fb   :  { %v1106_v54 = vpop.permute.xlu0 %1105 }
0x16fc   :  { %1347 = vmatmul.mubr.msk.bf16.vlgmr.msra.gmra.mrb[16].mxu1 %vm227_vm2, %v1106_v54 }
0x16ff   :  { %v820_v55 = vpop.permute.xlu0 %819 }
0x1700   :  { %822 = vst.msk [vmem:[#allocation13] sm:$0x3] %vm816_vm10, %v820_v55 }
0x1701   :  { %1520 = shalt.err (!%p1517_p8)
}
0x1702   :  { %s1521_s13 = scalar_lea.hbm %s1932_s6, 32 }
0x1703   :  { %p1522_p9 = scmp.ne.s32.totalorder %s1932_s6, %s1521_s13  ;;  %p1525_p10 = scmp.lt.u32.totalorder %s1521_s13, %s1932_s6 }
0x1705   :  { %p1527_p11 = pnand %p1525_p10, %p1522_p9 }
0x1707   :  { %1530 = shalt.err (!%p1527_p11)
}
0x1708   :  { %1187 = dma.vmem_to_hbm [thread:$0]  %s1185_s9, 32, %s1932_s6, [#allocation12]  }
0x1709   :  { %s1601_s18 = smov [#allocation13]  }
0x170a   :  { %s1194_s19 = sshll.u32 %s1601_s18, 4  ;;  %s1195_s19 = int_to_ptr.vmem [resolvable:$true] %s1194_s19 }
0x170b   :  { %s1531_s20 = scalar_lea.vmem %s1195_s19, 32  ;;  %p1536_p13 = scmp.lt.s32.totalorder %s1195_s19, %s1195_s19 }
0x170c   :  { %p1532_p12 = scmp.ne.s32.totalorder %s1195_s19, %s1531_s20  ;;  %p1537_p0 = scmp.lt.s32.totalorder %s1531_s20, %s1531_s20 }
0x170e   :  { %p1538_p1 = por %p1537_p0, %p1536_p13 }
0x1710   :  { %p1539_p2 = pnand %p1538_p1, %p1532_p12 }
0x1712   :  { %1542 = shalt.err (!%p1539_p2)
}
0x1713   :  { %s1543_s24 = scalar_lea.hbm %s1933_s7, 32 }
0x1714   :  { %p1544_p3 = scmp.ne.s32.totalorder %s1933_s7, %s1543_s24  ;;  %p1547_p4 = scmp.lt.u32.totalorder %s1543_s24, %s1933_s7 }
0x1716   :  { %p1549_p5 = pnand %p1547_p4, %p1544_p3 }
0x1718   :  { %1552 = shalt.err (!%p1549_p5)
}
0x1719   :  { %1197 = dma.vmem_to_hbm [thread:$0]  %s1195_s19, 32, %s1933_s7, [#allocation12]   ;;  %v1102_v11 = vsub.s32 1, %v1738_v10  ;;  %vm1163_vm11 = vcmask 64512  }
0x171a   :  { %s1602_s29 = smov [#allocation10]  }
0x171b   :  { %v1103_v28 = vrot.slane %v1746_v14, %v1102_v11  ;;  %s1171_s4 = sshll.u32 %s1602_s29, 4  ;;  %s1172_s4 = int_to_ptr.vmem [resolvable:$true] %s1171_s4 }
0x171c   :  { %s1553_s30 = scalar_lea.vmem %s1172_s4, 256  ;;  %p1558_p7 = scmp.lt.s32.totalorder %s1172_s4, %s1172_s4 }
0x171d   :  { %p1554_p6 = scmp.ne.s32.totalorder %s1172_s4, %s1553_s30  ;;  %p1559_p8 = scmp.lt.s32.totalorder %s1553_s30, %s1553_s30 }
0x171f   :  { %p1560_p9 = por %p1559_p8, %p1558_p7 }
0x1721   :  { %p1561_p10 = pnand %p1560_p9, %p1554_p6 }
0x17cf   :  { %v1156_v56 = vpop.f32.mrb[16].mxu1 }
0x17d0   :  { %v1157_v57 = vadd.f32 %v1156_v56, %v1103_v28  ;;  %v1348_v58 = vpop.f32.mrb[17].mxu1 }
0x17d1   :  { %v1159_v59 = vpop.f32.mrb[18].mxu1 }
0x17d2   :  { %v1160_v60 = vadd.f32 %v1159_v59, %v1103_v28  ;;  %v1349_v61 = vpop.f32.mrb[19].mxu1  ;;  %1164 = vst.msk [vmem:[#allocation10] sm:$0xff] %vm1163_vm11, %v1157_v57 }
0x17d4   :  { %1165 = vst.msk [vmem:[#allocation10 + $0x8] sm:$0xff] %vm1163_vm11, %v1160_v60 }
0x17d5   :  { %1564 = shalt.err (!%p1561_p10)
}
0x17d6   :  { %s1565_s9 = scalar_lea.hbm %s1931_s5, 256 }
0x17d7   :  { %p1566_p11 = scmp.ne.s32.totalorder %s1931_s5, %s1565_s9  ;;  %p1569_p12 = scmp.lt.u32.totalorder %s1565_s9, %s1931_s5 }
0x17d9   :  { %p1571_p13 = pnand %p1569_p12, %p1566_p11 }
0x17db   :  { %1574 = shalt.err (!%p1571_p13)
}
0x17dc   :  { %1177 = dma.vmem_to_hbm [thread:$0]  %s1172_s4, 256, %s1931_s5, [#allocation4], %s1587_s1, %s1587_s1, %s1588_s23  }
0x17dd   :  { %1581 = dma.done.wait [#allocation4], 256  }
0x17de   :  { %1582 = vsyncadd [#allocation4], 4294967040 }
0x17df   :  { %1583 = dma.done.wait [#allocation12], 64  }
0x17e0   :  { %1584 = vsyncadd [#allocation12], 4294967232 }
0x17e1   :  { %1207 = vsyncpa [#allocation3], 1 }
0x17e2   :  { %1208 = vsyncpa [#allocation6], 1 }
0x17e3   :  { %1209 = vsyncpa [#allocation9], 1 }
0x17e4   :  { %1210 = vsyncpa [#allocation4], 1 }
0x17e5   :  { %1211 = vsyncpa [#allocation12], 1 }

</bundles_post_ra>
